<compile_context>
chip_gen: v5e
topology: v5e:2x2
jax: 0.10.0
libtpu: 0.0.40
codegen_flags: <defaults>
</compile_context>

<pallas_src>
import functools

import jax
import jax.numpy as jnp
from jax.experimental import pallas as pl
from jax.experimental.pallas import tpu as pltpu


def _round_up(x, m):
    return ((x + m - 1) // m) * m


# ---------------------------------------------------------------------------
# Fused kernel
# ---------------------------------------------------------------------------
def mim_fused_kernel(patches_ref, mask_ref, we_ref, be_ref, token_ref,
                     wd_ref, bd_ref, out_ref):
    """Per tile of TM tokens: patch-embed -> mask-token mix -> 1x1-conv decoder
    -> per-row masked-L1 partial sums (written as a (TM, 1) f32 block)."""
    x = patches_ref[...]                                     # (TM, Kc) bf16
    # encoder[0] stand-in: patch-embed conv (p x p, stride p) == matmul on MXU
    feat = jnp.dot(x, we_ref[...], preferred_element_type=jnp.float32)
    feat = feat + be_ref[...]
    # mask-token mixing in f32 on the VPU: x*(1-w) + mask_token*w
    w = mask_ref[...]                                        # (TM, 1) f32
    feat = feat * (1.0 - w) + token_ref[...] * w
    # TODO(synk): yolo encoder stages encoder[1:9] are external; identity here.
    # decoder (heavily=False): Conv2d 1x1 == matmul; PixelShuffle(p) is layout-only
    rec = jnp.dot(feat.astype(wd_ref.dtype), wd_ref[...],
                  preferred_element_type=jnp.float32)
    rec = rec + bd_ref[...]
    # masked L1: one lane-reduce (XLU) per row, then a (TM,1) VPU multiply by w
    row_l1 = jnp.sum(jnp.abs(x.astype(jnp.float32) - rec), axis=-1,
                     keepdims=True)                          # (TM, 1)
    out_ref[...] = row_l1 * w                                # per-row partials


# ---------------------------------------------------------------------------
# Parameters
# ---------------------------------------------------------------------------
def init_params(key, *, in_chans, patch_size, embed_dim):
    p = patch_size
    k1, k2, k3 = jax.random.split(key, 3)
    # patch-embed conv weight, pre-transposed for matmul: (C*p*p, embed_dim)
    we = jax.random.normal(k1, (in_chans * p * p, embed_dim), jnp.float32) * 0.02
    be = jnp.zeros((1, embed_dim), jnp.float32)
    # decoder Conv2d 1x1 weight, pre-transposed: (embed_dim, p*p*in_chans)
    wd = jax.random.normal(k2, (embed_dim, p * p * in_chans), jnp.float32) * 0.02
    bd = jnp.zeros((1, p * p * in_chans), jnp.float32)
    mask_token = jax.random.normal(k3, (1, embed_dim), jnp.float32) * 0.02
    return dict(we=we, be=be, wd=wd, bd=bd, mask_token=mask_token)


# ---------------------------------------------------------------------------
# Capability / sizing helpers
# ---------------------------------------------------------------------------
def _probe_kernel(x_ref, o_ref):
    o_ref[...] = x_ref[...]


@functools.lru_cache(maxsize=None)
def _buffered1_supported():
    """True iff this JAX build accepts pipeline_mode=pl.Buffered(1) on a
    top-level pallas_call BlockSpec (single-buffered resident weights).
    Runs a tiny probe kernel eagerly; call this OUTSIDE jit."""
    try:
        spec = pl.BlockSpec((8, 128), lambda i: (0, 0),
                            pipeline_mode=pl.Buffered(1))
        fn = pl.pallas_call(
            _probe_kernel,
            out_shape=jax.ShapeDtypeStruct((8, 128), jnp.float32),
            grid=(1,),
            in_specs=[spec],
            out_specs=pl.BlockSpec((8, 128), lambda i: (0, 0)),
        )
        jax.block_until_ready(fn(jnp.zeros((8, 128), jnp.float32)))
        return True
    except Exception:
        return False


def _vmem_budget_bytes():
    """Per-generation scoped-VMEM budget: ~75% of physical capacity
    (~48 MiB on v7x's 64 MiB, ~96 MiB on v5e/v6e's 128 MiB), capped at 100 MiB."""
    try:
        cap = pltpu.get_tpu_info().vmem_capacity_bytes
    except Exception:
        cap = 64 * 1024 * 1024            # conservative default (v7x per-core)
    return int(min(cap * 3 // 4, 100 * 1024 * 1024))


def _vmem_per_step_bytes(tm, kc, e, in_bufs, w_bufs):
    """Worst-case VMEM for one grid step, counting the f32 intermediates
    (feat TM x E, rec/diff TM x Kc) that live alongside the pipelined blocks."""
    bf16, f32 = 2, 4
    stream = in_bufs * tm * (kc * bf16 + 1 * f32)            # patches + mask
    weights = w_bufs * (2 * kc * e * bf16 + (2 * e + kc) * f32)
    interm = tm * (e + 2 * kc) * f32                         # feat, rec, |diff|
    out = in_bufs * tm * f32
    return stream + weights + interm + out


def _choose_tile(n, kc, e, budget, tm_cap, w_bufs):
    """Largest token tile (multiple of 8) that fits the VMEM budget, preferring
    a divisor of N (-> no padding) with an even grid (v7x megacore balance)."""
    tm_max = min(tm_cap, _round_up(n, 8))
    tm_max = max(8, (tm_max // 8) * 8)
    while tm_max > 8 and _vmem_per_step_bytes(tm_max, kc, e, 2, w_bufs) > budget:
        tm_max -= 8
    cands = [t for t in range(8, min(tm_max, n) + 1, 8) if n % t == 0]
    if n <= tm_max:
        cands.append(n)                    # full-extent block is always legal
    if cands:
        best = max(cands)
        even = [t for t in cands if (n // t) % 2 == 0]
        if even and max(even) * 2 >= best:  # even grid at <= 2x more steps
            best = max(even)
        return best, False
    # no usable divisor -> pad the token axis (padded rows carry mask == 0)
    return tm_max, True


# ---------------------------------------------------------------------------
# Forward (training path)
# ---------------------------------------------------------------------------
def mim_head_forward(imgs, masks, params, *, patch_size, embed_dim,
                     in_chans=3, tile_m=None, use_bf16=True,
                     weight_single_buffer=None):
    """Training-mode forward: returns the scalar MIM loss (heavily=False)."""
    B, C, H, W = imgs.shape
    assert C == in_chans
    p = patch_size
    Hf, Wf = H // p, W // p
    N = B * Hf * Wf
    Kc = C * p * p

    # bf16 matmul operands are the native MXU input dtype on v5e/v6e/v7x and
    # halve the dominant HBM read; all VPU mask-mix / L1 math stays in f32.
    compute_dtype = jnp.bfloat16 if use_bf16 else jnp.float32

    # --- patchify NCHW -> (N, C*p*p) token rows, per-token order (c, ph, pw).
    # One chained reshape/transpose/cast so XLA fuses it into a single HBM
    # copy pass under jit (the only wrapper-side pass over imgs; no jnp.pad).
    # TODO(synk): full in-kernel patchify (BlockSpec over the 6-D view) would
    # remove this pass too, but the in-kernel (c,ph,pw) rearrangement risks
    # (8,128)-crossing relayouts for small p; kept as one fused pre-pass.
    patches_in = (imgs.reshape(B, C, Hf, p, Wf, p)
                  .transpose(0, 2, 4, 1, 3, 5)
                  .reshape(N, Kc)
                  .astype(compute_dtype))
    mask_flat = masks.reshape(N, 1).astype(jnp.float32)

    we = params["we"].astype(compute_dtype)
    wd = params["wd"].astype(compute_dtype)
    be = params["be"].astype(jnp.float32)
    bd = params["bd"].astype(jnp.float32)
    token = params["mask_token"].astype(jnp.float32)

    # --- weight buffering: constants never change across the grid, so single
    # buffering (Buffered(1)) halves their VMEM footprint when supported.
    if weight_single_buffer is None:
        weight_single_buffer = _buffered1_supported()   # probe; run outside jit
    w_bufs = 1 if weight_single_buffer else 2

    # --- tile the token axis against the per-generation VMEM budget ----------
    budget = _vmem_budget_bytes()
    TM, need_pad = _choose_tile(N, Kc, embed_dim, budget,
                                tm_cap=(tile_m if tile_m else 2048),
                                w_bufs=w_bufs)
    if need_pad:
        Npad = _round_up(N, TM)
        patches_in = jnp.pad(patches_in, ((0, Npad - N), (0, 0)))
        mask_flat = jnp.pad(mask_flat, ((0, Npad - N), (0, 0)))  # mask=0 rows
    else:
        Npad = N
    G = Npad // TM

    def const_spec(shape):
        if weight_single_buffer:
            return pl.BlockSpec(shape, lambda i: (0, 0),
                                pipeline_mode=pl.Buffered(1))
        return pl.BlockSpec(shape, lambda i: (0, 0))

    # NOTE(v7x): if a profile shows exposed DMA on the streamed patches, add
    # pipeline_mode=pl.Buffered(3) to the first two in_specs (paid for by the
    # VMEM freed by single-buffered weights).
    row_l1 = pl.pallas_call(
        mim_fused_kernel,
        out_shape=jax.ShapeDtypeStruct((Npad, 1), jnp.float32),
        grid=(G,),
        in_specs=[
            pl.BlockSpec((TM, Kc), lambda i: (i, 0)),   # streamed token rows
            pl.BlockSpec((TM, 1), lambda i: (i, 0)),    # streamed per-token mask
            const_spec(we.shape),                       # resident weights/bias
            const_spec(be.shape),
            const_spec(token.shape),
            const_spec(wd.shape),
            const_spec(bd.shape),
        ],
        out_specs=pl.BlockSpec((TM, 1), lambda i: (i, 0)),
        compiler_params=pltpu.CompilerParams(
            dimension_semantics=("parallel",),
            vmem_limit_bytes=budget,
        ),
    )(patches_in, mask_flat, we, be, token, wd, bd)

    num = jnp.sum(row_l1)
    # masks.repeat_interleave(p,1).repeat_interleave(p,2).sum() == p*p*masks.sum()
    den = (p * p) * jnp.sum(masks.astype(jnp.float32))

    weight = 0.2  # heavily=False -> 0.2 ** (i + 1), single decoder (i = 0)
    return weight * num / (den + 1e-5) / in_chans


# ---------------------------------------------------------------------------
# Pure-JAX reference (image-space, same precision path)
# ---------------------------------------------------------------------------
def reference_loss(imgs, masks, params, *, patch_size, in_chans, use_bf16=True):
    B, C, H, W = imgs.shape
    p = patch_size
    Hf, Wf = H // p, W // p
    N = B * Hf * Wf
    cd = jnp.bfloat16 if use_bf16 else jnp.float32

    patches = imgs.reshape(B, C, Hf, p, Wf, p).transpose(0, 2, 4, 1, 3, 5)
    patches = patches.reshape(N, C * p * p).astype(cd)
    feat = jnp.dot(patches, params["we"].astype(cd),
                   preferred_element_type=jnp.float32) + params["be"]
    w = masks.reshape(N, 1).astype(jnp.float32)
    feat = feat * (1.0 - w) + params["mask_token"] * w
    rec_tok = jnp.dot(feat.astype(cd), params["wd"].astype(cd),
                      preferred_element_type=jnp.float32) + params["bd"]
    # PixelShuffle(p): channel order (c, i, j) -> image (B, C, H, W)
    rec = rec_tok.reshape(B, Hf, Wf, C, p, p).transpose(0, 3, 1, 4, 2, 5)
    rec = rec.reshape(B, C, H, W)
    x = patches.astype(jnp.float32).reshape(B, Hf, Wf, C, p, p)
    x = x.transpose(0, 3, 1, 4, 2, 5).reshape(B, C, H, W)
    mask_up = jnp.repeat(jnp.repeat(masks.astype(jnp.float32), p, axis=1),
                         p, axis=2)[:, None, :, :]
    num = jnp.sum(jnp.abs(x - rec) * mask_up)
    den = jnp.sum(mask_up)
    return 0.2 * num / (den + 1e-5) / in_chans


if __name__ == "__main__":
    key = jax.random.PRNGKey(0)
    B, C, H, W = 2, 3, 32, 32
    patch_size = 4            # encoder_stride[-1] == encoder.patch_size
    # NOTE: real configs should use embed_dim (and Kc=C*p*p) >= 128 (ideally
    # multiples of 256 on v6e/v7x) to fill the MXU; small demo dims here.
    embed_dim = 32            # num_features[-1] == embed_dim

    k_img, k_mask, k_param = jax.random.split(key, 3)
    imgs = jax.random.normal(k_img, (B, C, H, W), jnp.float32)
    Hf, Wf = H // patch_size, W // patch_size
    masks = (jax.random.uniform(k_mask, (B, Hf, Wf)) < 0.6).astype(jnp.float32)

    params = init_params(k_param, in_chans=C, patch_size=patch_size,
                         embed_dim=embed_dim)

    # decide weight single-buffering with an eager probe (outside jit)
    wsb = _buffered1_supported()

    # auto tiling picks TM=64 here -> G=2 (even grid, no padding)
    loss_fn = jax.jit(functools.partial(
        mim_head_forward, patch_size=patch_size, embed_dim=embed_dim,
        in_chans=C, tile_m=None, use_bf16=True, weight_single_buffer=wsb))
    loss = jax.block_until_ready(loss_fn(imgs, masks, params))

    loss_ref = jax.block_until_ready(
        reference_loss(imgs, masks, params, patch_size=patch_size,
                       in_chans=C, use_bf16=True))

    lk, lr = float(loss), float(loss_ref)
    assert loss.shape == ()
    assert abs(lk - lr) <= 2e-2 * abs(lr) + 1e-5, (lk, lr)
    print("KERNEL_OK")
</pallas_src>

<mosaic_0001>
module attributes {stable_mosaic.version = 11 : i64} {
  func.func @_probe_kernel(%arg0: i32, %arg1: memref<8x128xf32, #tpu.memory_space<vmem>>, %arg2: memref<8x128xf32, #tpu.memory_space<vmem>>) attributes {dimension_semantics = [#tpu.dimension_semantics<arbitrary>], iteration_bounds = array<i64: 1>, scalar_prefetch = 0 : i64, scratch_operands = 0 : i64, tpu.core_type = #tpu.core_type<tc>, window_params = [{pipeline_mode = #tpu.pipeline_mode<synchronous>, transform_indices = @transform_0, window_bounds = array<i64: 8, 128>}, {pipeline_mode = #tpu.pipeline_mode<synchronous>, transform_indices = @transform_1, window_bounds = array<i64: 8, 128>}]} {
    %c0 = arith.constant 0 : index
    %c0_0 = arith.constant 0 : index
    %0 = vector.load %arg1[%c0, %c0_0] : memref<8x128xf32, #tpu.memory_space<vmem>>, vector<8x128xf32>
    %c0_1 = arith.constant 0 : index
    %c0_2 = arith.constant 0 : index
    %1 = vector.load %arg2[%c0_1, %c0_2] : memref<8x128xf32, #tpu.memory_space<vmem>>, vector<8x128xf32>
    tpu.vector_store %arg2[%c0_1, %c0_2], %0 {strides = array<i32>} : memref<8x128xf32, #tpu.memory_space<vmem>>, vector<8x128xf32>,
    return
  }
  func.func @transform_0(%arg0: i32) -> (i32, i32) {
    %c0_i32 = arith.constant 0 : i32
    %c0_i32_0 = arith.constant 0 : i32
    %c0_i32_1 = arith.constant 0 : i32
    return %c0_i32, %c0_i32_0 : i32, i32
  }
  func.func @transform_1(%arg0: i32) -> (i32, i32) {
    %c0_i32 = arith.constant 0 : i32
    %c0_i32_0 = arith.constant 0 : i32
    %c0_i32_1 = arith.constant 0 : i32
    return %c0_i32, %c0_i32_0 : i32, i32
  }
}

module attributes {stable_mosaic.version = 11 : i64} {
  func.func @mim_fused_kernel(%arg0: i32, %arg1: memref<64x48xbf16, #tpu.memory_space<vmem>>, %arg2: memref<64x1xf32, #tpu.memory_space<vmem>>, %arg3: memref<48x32xbf16, #tpu.memory_space<vmem>>, %arg4: memref<1x32xf32, #tpu.memory_space<vmem>>, %arg5: memref<1x32xf32, #tpu.memory_space<vmem>>, %arg6: memref<32x48xbf16, #tpu.memory_space<vmem>>, %arg7: memref<1x48xf32, #tpu.memory_space<vmem>>, %arg8: memref<64x1xf32, #tpu.memory_space<vmem>>) attributes {dimension_semantics = [#tpu.dimension_semantics<parallel>], iteration_bounds = array<i64: 2>, scalar_prefetch = 0 : i64, scratch_operands = 0 : i64, tpu.core_type = #tpu.core_type<tc>, window_params = [{transform_indices = @transform_0, window_bounds = array<i64: 64, 48>}, {transform_indices = @transform_1, window_bounds = array<i64: 64, 1>}, {pipeline_mode = #tpu.pipeline_mode<synchronous>, transform_indices = @transform_2, window_bounds = array<i64: 48, 32>}, {pipeline_mode = #tpu.pipeline_mode<synchronous>, transform_indices = @transform_3, window_bounds = array<i64: 1, 32>}, {pipeline_mode = #tpu.pipeline_mode<synchronous>, transform_indices = @transform_4, window_bounds = array<i64: 1, 32>}, {pipeline_mode = #tpu.pipeline_mode<synchronous>, transform_indices = @transform_5, window_bounds = array<i64: 32, 48>}, {pipeline_mode = #tpu.pipeline_mode<synchronous>, transform_indices = @transform_6, window_bounds = array<i64: 1, 48>}, {transform_indices = @transform_7, window_bounds = array<i64: 64, 1>}]} {
    %c0 = arith.constant 0 : index
    %c0_0 = arith.constant 0 : index
    %0 = vector.load %arg1[%c0, %c0_0] : memref<64x48xbf16, #tpu.memory_space<vmem>>, vector<64x48xbf16>
    %c0_1 = arith.constant 0 : index
    %c0_2 = arith.constant 0 : index
    %1 = vector.load %arg3[%c0_1, %c0_2] : memref<48x32xbf16, #tpu.memory_space<vmem>>, vector<48x32xbf16>
    %cst = arith.constant dense<0.000000e+00> : vector<64x32xf32>
    %2 = tpu.matmul %0, %1, %cst {dimension_numbers = #tpu.dot_dimension_numbers<[1], [0], [0], [1], [0, 0, 1, 1], [], []>} : vector<64x48xbf16>, vector<48x32xbf16>, vector<64x32xf32> -> vector<64x32xf32>
    %c0_3 = arith.constant 0 : index
    %c0_4 = arith.constant 0 : index
    %3 = vector.load %arg4[%c0_3, %c0_4] : memref<1x32xf32, #tpu.memory_space<vmem>>, vector<1x32xf32>
    %4 = vector.broadcast %3 : vector<1x32xf32> to vector<64x32xf32>
    %5 = arith.addf %2, %4 : vector<64x32xf32>
    %c0_5 = arith.constant 0 : index
    %c0_6 = arith.constant 0 : index
    %6 = vector.load %arg2[%c0_5, %c0_6] : memref<64x1xf32, #tpu.memory_space<vmem>>, vector<64x1xf32>
    %cst_7 = arith.constant 1.000000e+00 : f32
    %7 = vector.broadcast %cst_7 : f32 to vector<64x1xf32>
    %8 = arith.subf %7, %6 : vector<64x1xf32>
    %9 = vector.broadcast %8 : vector<64x1xf32> to vector<64x32xf32>
    %10 = arith.mulf %5, %9 : vector<64x32xf32>
    %c0_8 = arith.constant 0 : index
    %c0_9 = arith.constant 0 : index
    %11 = vector.load %arg5[%c0_8, %c0_9] : memref<1x32xf32, #tpu.memory_space<vmem>>, vector<1x32xf32>
    %12 = vector.broadcast %11 : vector<1x32xf32> to vector<64x32xf32>
    %13 = vector.broadcast %6 : vector<64x1xf32> to vector<64x32xf32>
    %14 = arith.mulf %12, %13 : vector<64x32xf32>
    %15 = arith.addf %10, %14 : vector<64x32xf32>
    %16 = arith.truncf %15 : vector<64x32xf32> to vector<64x32xbf16>
    %c0_10 = arith.constant 0 : index
    %c0_11 = arith.constant 0 : index
    %17 = vector.load %arg6[%c0_10, %c0_11] : memref<32x48xbf16, #tpu.memory_space<vmem>>, vector<32x48xbf16>
    %cst_12 = arith.constant dense<0.000000e+00> : vector<64x48xf32>
    %18 = tpu.matmul %16, %17, %cst_12 {dimension_numbers = #tpu.dot_dimension_numbers<[1], [0], [0], [1], [0, 0, 1, 1], [], []>} : vector<64x32xbf16>, vector<32x48xbf16>, vector<64x48xf32> -> vector<64x48xf32>
    %c0_13 = arith.constant 0 : index
    %c0_14 = arith.constant 0 : index
    %19 = vector.load %arg7[%c0_13, %c0_14] : memref<1x48xf32, #tpu.memory_space<vmem>>, vector<1x48xf32>
    %20 = vector.broadcast %19 : vector<1x48xf32> to vector<64x48xf32>
    %21 = arith.addf %18, %20 : vector<64x48xf32>
    %22 = arith.extf %0 : vector<64x48xbf16> to vector<64x48xf32>
    %23 = arith.subf %22, %21 : vector<64x48xf32>
    %24 = math.absf %23 : vector<64x48xf32>
    %cst_15 = arith.constant dense<0.000000e+00> : vector<64xf32>
    %25 = vector.multi_reduction <add>, %24, %cst_15 [1] : vector<64x48xf32> to vector<64xf32>
    %26 = vector.shape_cast %25 : vector<64xf32> to vector<64x1xf32>
    %27 = arith.mulf %26, %6 : vector<64x1xf32>
    %c0_16 = arith.constant 0 : index
    %c0_17 = arith.constant 0 : index
    %28 = vector.load %arg8[%c0_16, %c0_17] : memref<64x1xf32, #tpu.memory_space<vmem>>, vector<64x1xf32>
    tpu.vector_store %arg8[%c0_16, %c0_17], %27 {strides = array<i32>} : memref<64x1xf32, #tpu.memory_space<vmem>>, vector<64x1xf32>,
    return
  }
  func.func @transform_0(%arg0: i32) -> (i32, i32) {
    %c0_i32 = arith.constant 0 : i32
    %c0_i32_0 = arith.constant 0 : i32
    return %arg0, %c0_i32 : i32, i32
  }
  func.func @transform_1(%arg0: i32) -> (i32, i32) {
    %c0_i32 = arith.constant 0 : i32
    %c0_i32_0 = arith.constant 0 : i32
    return %arg0, %c0_i32 : i32, i32
  }
  func.func @transform_2(%arg0: i32) -> (i32, i32) {
    %c0_i32 = arith.constant 0 : i32
    %c0_i32_0 = arith.constant 0 : i32
    %c0_i32_1 = arith.constant 0 : i32
    return %c0_i32, %c0_i32_0 : i32, i32
  }
  func.func @transform_3(%arg0: i32) -> (i32, i32) {
    %c0_i32 = arith.constant 0 : i32
    %c0_i32_0 = arith.constant 0 : i32
    %c0_i32_1 = arith.constant 0 : i32
    return %c0_i32, %c0_i32_0 : i32, i32
  }
  func.func @transform_4(%arg0: i32) -> (i32, i32) {
    %c0_i32 = arith.constant 0 : i32
    %c0_i32_0 = arith.constant 0 : i32
    %c0_i32_1 = arith.constant 0 : i32
    return %c0_i32, %c0_i32_0 : i32, i32
  }
  func.func @transform_5(%arg0: i32) -> (i32, i32) {
    %c0_i32 = arith.constant 0 : i32
    %c0_i32_0 = arith.constant 0 : i32
    %c0_i32_1 = arith.constant 0 : i32
    return %c0_i32, %c0_i32_0 : i32, i32
  }
  func.func @transform_6(%arg0: i32) -> (i32, i32) {
    %c0_i32 = arith.constant 0 : i32
    %c0_i32_0 = arith.constant 0 : i32
    %c0_i32_1 = arith.constant 0 : i32
    return %c0_i32, %c0_i32_0 : i32, i32
  }
  func.func @transform_7(%arg0: i32) -> (i32, i32) {
    %c0_i32 = arith.constant 0 : i32
    %c0_i32_0 = arith.constant 0 : i32
    return %arg0, %c0_i32 : i32, i32
  }
}

</mosaic_0001>

<bundles_post_ra>
// kernel: tpu_custom_call.1
= control target key start
LH: loop header
LB: loop body
LE: loop exit
PB: predicated region body
PF: predicated region fallthrough
CT: control target
= control target key end

     0   :  { %6 = vsyncpa [#allocation3], 0  ;;  %s114_s0 = inlined_call_operand.hbm [shape: f32[8,128], index: 0, kind: input, shape index: {}]   ;;  %s115_s1 = inlined_call_operand.hbm [shape: f32[8,128], index: 1, kind: output, shape index: {}]  }
   0x1   :  { %7 = vsyncpa [#allocation4], 0  ;;  %s13_s8 = sshll.u32 %s114_s0, 4  ;;  %s96_s9 = smov [#allocation2]   ;;  %s14_s8 = int_to_ptr.hbm [resolvable:$true] %s13_s8 }
   0x2   :  { %s15_s10 = sshll.u32 %s96_s9, 4  ;;  %s16_s10 = int_to_ptr.vmem [resolvable:$true] %s15_s10 }
   0x3   :  { %18 = dma.hbm_to_vmem [thread:$0]  %s14_s8, 128, %s16_s10, [#allocation3]  }
   0x4   :  { %92 = dma.done.wait [#allocation3], 128  }
   0x5   :  { %93 = vsyncadd [#allocation3], 4294967168  ;;  %s97_s11 = smov [#allocation5]   ;;  %s32_s15 = sshll.u32 %s115_s1, 4  ;;  %v23_v0 = vld [vmem:[#allocation2] sm:$0xff]  ;;  %s33_s15 = int_to_ptr.hbm [resolvable:$true] %s32_s15 }
   0x6   :  { %s30_s12 = sshll.u32 %s97_s11, 4  ;;  %24 = vst [vmem:[#allocation5] sm:$0xff] %v23_v0  ;;  %s31_s12 = int_to_ptr.vmem [resolvable:$true] %s30_s12 }
   0x7   :  { %35 = dma.vmem_to_hbm [thread:$0]  %s31_s12, 128, %s33_s15, [#allocation4]  }
   0x8   :  { %94 = dma.done.wait [#allocation4], 128  }
   0x9   :  { %95 = vsyncadd [#allocation4], 4294967168 }
   0xa   :  { %40 = vsyncpa [#allocation3], 1 }
   0xb   :  { %41 = vsyncpa [#allocation4], 1 }

// kernel: mim_head_forward.1
= control target key start
LH: loop header
LB: loop body
LE: loop exit
PB: predicated region body
PF: predicated region fallthrough
CT: control target
= control target key end

     0   :  { %s861_s24 = smov 0   ;;  %s997_s0 = inlined_call_operand.vmem [shape: bf16[128,48], index: 0, kind: input, shape index: {}]   ;;  %s998_s1 = inlined_call_operand.vmem [shape: f32[128,1], index: 1, kind: input, shape index: {}]   ;;  %s999_s2 = inlined_call_operand.vmem [shape: bf16[48,32], index: 2, kind: input, shape index: {}]   ;;  %s1000_s3 = inlined_call_operand.vmem [shape: f32[1,32], index: 3, kind: input, shape index: {}]   ;;  %s1001_s4 = inlined_call_operand.vmem [shape: f32[1,32], index: 4, kind: input, shape index: {}]   ;;  %s1002_s5 = inlined_call_operand.vmem [shape: bf16[32,48], index: 5, kind: input, shape index: {}]   ;;  %s1003_s6 = inlined_call_operand.vmem [shape: f32[1,48], index: 6, kind: input, shape index: {}]   ;;  %s1004_s7 = inlined_call_operand.vmem [shape: f32[128,1], index: 7, kind: output, shape index: {}]  }
   0x1 LB: > { %s726_s25 = sadd.s32 4294967295, %s818_s24   ;;  %p730_p0 = scmp.ge.s32.totalorder %s818_s24, 1  ;;  %s818_s24 = sphi %s861_s24, %s17_s24  }
   0x2   : > { %p249_p1 = scmp.lt.s32.totalorder %s818_s24, 3 }
   0x4   : > { %p250_p2 = pnand %p730_p0, %p249_p1 }
   0x5   : > { %s731_s28 = sshll.u32 (!%p250_p2), %s726_s25, 3 }
   0x6   : > { %253 = sbr.rel (%p250_p2) target bundleno = 480 (0x1e0), region = 48  ;;  %p287_p3 = scmp.lt.s32.totalorder (!%p250_p2), %s731_s28, 15 }
   0xb   : > { %v789_v0 = vld [vmem:[%s999_s2 + $0x10] sm:$0xff]  ;;  %v820_v1 = vmov 0   ;;  %v788_v2 = vld [vmem:[%s999_s2 + $0x8] sm:$0xff]  ;;  %s1006_s28 = smov (!%p287_p3, %s731_s28), 15  ;;  %v787_v3 = vld [vmem:[%s999_s2] sm:$0xff]  ;;  %vm361_vm0 = vcmask 392192  }
   0xc   : > { %807 = vset.pattern.permute.xlu1 %v820_v1  ;;  %806 = vset.pattern.permute.xlu0 %v820_v1  ;;  %s734_s8 = sshll.u32 %s1006_s28, 3  ;;  %s732_s9 = sshll.u32 %s1006_s28, 2  ;;  %v791_v28 = vld [vmem:[%s1002_s5 + $0x8] sm:$0xff]  ;;  %v790_v31 = vld [vmem:[%s1002_s5] sm:$0xff]  ;;  %vm551_vm1 = vcmask 261120   ;;  %vm649_vm2 = vcmask 7168  }
   0xd   : > { %379 = vmatpush.bf16.msra.mxu0 %v789_v0  ;;  %792 = vmatpush.bf16.msra.mxu2 %v789_v0  ;;  %s884_s12 = scalar_lea.vmem %s998_s1, %s734_s8  ;;  %s895_s17 = scalar_lea.vmem %s997_s0, %s732_s9  ;;  %v810_v43 = vld [vmem:[%s1000_s3] ss:$0 sm:$0xff] }
   0xe   : > { %808 = vset.pattern.permute.xlu2 %v820_v1  ;;  %v890_v4 = vld [vmem:[%s884_s12 + $0x10] sm:$0xff]  ;;  %v900_v6 = vld [vmem:[%s884_s12 + $0x20] sm:$0xff]  ;;  %v906_v10 = vld [vmem:[%s884_s12 + $0x18] sm:$0xff]  ;;  %570 = vmatpush.bf16.msra.mxu1 %v791_v28  ;;  %s302_s10 = scalar_lea.vmem %s1004_s7, %s734_s8 }
   0xf   : > { %483 = vperm.xlu1 %807, %v890_v4   ;;  %v413_v5 = vsub.f32 1.0, %v890_v4  ;;  %v783_v7 = vld [vmem:[%s895_s17] sm:$0xff]  ;;  %v415_v8 = vsub.f32 1.0, %v900_v6  ;;  %v785_v9 = vld [vmem:[%s895_s17 + $0x10] sm:$0xff]  ;;  %v414_v11 = vsub.f32 1.0, %v906_v10  ;;  %v912_v12 = vld [vmem:[%s884_s12 + $0x28] sm:$0xff]  ;;  %795 = vmatpush.bf16.msra.mxu3 %v791_v28 }
  0x10   : > { %v416_v13 = vsub.f32 1.0, %v912_v12  ;;  %v917_v14 = vld [vmem:[%s884_s12 + $0x30] sm:$0xff]  ;;  %v784_v16 = vld [vmem:[%s895_s17 + $0x8] sm:$0xff]  ;;  %v786_v17 = vld [vmem:[%s895_s17 + $0x18] sm:$0xff] }
  0x11   : > { %380 = vmatpush.bf16.msra.mxu0 %v788_v2  ;;  %793 = vmatpush.bf16.msra.mxu2 %v788_v2  ;;  %v417_v15 = vsub.f32 1.0, %v917_v14  ;;  %v925_v18 = vld [vmem:[%s884_s12 + $0x38] sm:$0xff]  ;;  %v932_v20 = vld [vmem:[%s884_s12 + $0x8] sm:$0xff]  ;;  %v935_v21 = vld [vmem:[%s884_s12] sm:$0xff] }
  0x12   : > { %431 = vperm.xlu0 %806, %v413_v5   ;;  %441 = vperm.xlu2 %808, %v415_v8   ;;  %v418_v19 = vsub.f32 1.0, %v925_v18  ;;  %v412_v22 = vsub.f32 1.0, %v932_v20  ;;  %v411_v23 = vsub.f32 1.0, %v935_v21  ;;  %v809_v47 = vld [vmem:[%s1001_s4] ss:$0 sm:$0xff] }
  0x13   : > { %571 = vmatpush.bf16.msra.mxu1 %v790_v31  ;;  %796 = vmatpush.bf16.msra.mxu3 %v790_v31 }
  0x15   : > { %381 = vmatpush.bf16.msra.mxu0 %v787_v3  ;;  %794 = vmatpush.bf16.msra.mxu2 %v787_v3 }
  0x17   : > { %488 = vperm.xlu1 %807, %v906_v10  }
  0x18   : > { %765 = vmatmul.msk.bf16.vlgmr.msra.gmra.mxu0 %vm361_vm0, %v783_v7  ;;  %767 = vmatmul.msk.bf16.vlgmr.msra.gmra.mxu2 %vm361_vm0, %v785_v9 }
  0x1a   : > { %436 = vperm.xlu0 %806, %v414_v11   ;;  %446 = vperm.xlu2 %808, %v416_v13  }
  0x1f   : > { %498 = vperm.xlu1 %807, %v912_v12  }
  0x22   : > { %493 = vperm.xlu0 %806, %v900_v6   ;;  %451 = vperm.xlu2 %808, %v417_v15  }
  0x27   : > { %503 = vperm.xlu1 %807, %v917_v14  }
  0x28   : > { %766 = vmatmul.msk.bf16.gmra.mxu0 %vm361_vm0, %v784_v16  ;;  %768 = vmatmul.msk.bf16.gmra.mxu2 %vm361_vm0, %v786_v17 }
  0x2a   : > { %456 = vperm.xlu0 %806, %v418_v19   ;;  %508 = vperm.xlu2 %808, %v925_v18  }
  0x2f   : > { %426 = vperm.xlu1 %807, %v412_v22  }
  0x32   : > { %421 = vperm.xlu0 %806, %v411_v23   ;;  %473 = vperm.xlu2 %808, %v935_v21  }
  0x3a   : > { %478 = vperm.xlu0 %806, %v932_v20  }
  0x6c   : > { %v442_v24 = vpop.permute.xlu2 %441 }
  0x74   : > { %v447_v27 = vpop.permute.xlu2 %446 }
  0x7c   : > { %v452_v34 = vpop.permute.xlu2 %451 }
  0x81   : > { %v484_v25 = vpop.permute.xlu1 %483 }
  0x82   : > { %v513_v54 = vmul.f32 %v809_v47, %v484_v25 }
  0x84   : > { %v432_v26 = vpop.permute.xlu0 %431  ;;  %v509_v38 = vpop.permute.xlu2 %508 }
  0x85   : > { %v518_v28 = vmul.f32 %v809_v47, %v509_v38 }
  0x89   : > { %v489_v29 = vpop.permute.xlu1 %488 }
  0x8a   : > { %v514_v55 = vmul.f32 %v809_v47, %v489_v29 }
  0x8c   : > { %v437_v30 = vpop.permute.xlu0 %436  ;;  %v474_v46 = vpop.permute.xlu2 %473 }
  0x8d   : > { %v511_v58 = vmul.f32 %v809_v47, %v474_v46 }
  0x91   : > { %v499_v35 = vpop.permute.xlu1 %498 }
  0x92   : > { %v516_v9 = vmul.f32 %v809_v47, %v499_v35 }
  0x94   : > { %v494_v33 = vpop.permute.xlu0 %493 }
  0x95   : > { %v383_v32 = vpop.f32.mrf.mxu0  ;;  %v515_v13 = vmul.f32 %v809_v47, %v494_v33 }
  0x96   : > { %v384_v45 = vadd.f32 %v810_v43, %v383_v32 }
  0x99   : > { %v504_v39 = vpop.permute.xlu1 %503 }
  0x9b   : > { %v393_v41 = vpop.f32.mrf.mxu2 }
  0x9c   : > { %v457_v37 = vpop.permute.xlu0 %456  ;;  %v394_v7 = vadd.f32 %v810_v43, %v393_v41  ;;  %v307_v41 = vld [vmem:[%s895_s17 + $0x8] sm:$0xff]  }
  0x9d   : > { %v385_v36 = vpop.f32.mrf.mxu0 }
  0x9e   : > { %v386_v50 = vadd.f32 %v810_v43, %v385_v36  ;;  %v463_v15 = vmul.f32 %v442_v24, %v394_v7  ;;  %v305_v24 = vld [vmem:[%s895_s17] sm:$0xff]  }
  0x9f   : > { %v593_v33 = vunpack.c.l.bf16 %v305_v24 }
  0xa0   : > { %v523_v17 = vadd.f32 %v515_v13, %v463_v15 }
  0xa1   : > { %v427_v48 = vpop.permute.xlu1 %426 }
  0xa2   : > { %v460_v57 = vmul.f32 %v427_v48, %v386_v50  ;;  %v596_v50 = vunpack.c.h.bf16 %v307_v41 }
  0xa3   : > { %v395_v61 = vpop.f32.mrf.mxu2 }
  0xa4   : > { %v422_v42 = vpop.permute.xlu0 %421  ;;  %v396_v5 = vadd.f32 %v810_v43, %v395_v61 }
  0xa5   : > { %v388_v40 = vpop.f32.mrf.mxu0  ;;  %v459_v52 = vmul.f32 %v422_v42, %v384_v45 }
  0xa6   : > { %v389_v44 = vadd.f32 %v810_v43, %v388_v40  ;;  %v464_v11 = vmul.f32 %v447_v27, %v396_v5  ;;  %v811_v27 = vld [vmem:[%s1003_s6] ss:$0 sm:$0xff] }
  0xa7   : > { %v519_v63 = vadd.f32 %v511_v58, %v459_v52 }
  0xa8   : > { %v461_v51 = vmul.f32 %v432_v26, %v389_v44  ;;  %v524_v16 = vadd.f32 %v516_v9, %v464_v11 }
  0xaa   : > { %v521_v62 = vadd.f32 %v513_v54, %v461_v51  ;;  %v529_v19 = vpack.c.bf16 %v524_v16, %v523_v17 }
  0xab   : > { %v398_v8 = vpop.f32.mrf.mxu2 }
  0xac   : > { %v479_v56 = vpop.permute.xlu0 %478  ;;  %v399_v25 = vadd.f32 %v810_v43, %v398_v8  ;;  %v311_v8 = vld [vmem:[%s895_s17 + $0x18] sm:$0xff]  }
  0xad   : > { %v390_v49 = vpop.f32.mrf.mxu0  ;;  %v512_v60 = vmul.f32 %v809_v47, %v479_v56  ;;  %v599_v11 = vunpack.c.l.bf16 %v311_v8 }
  0xae   : > { %v391_v53 = vadd.f32 %v810_v43, %v390_v49  ;;  %v465_v29 = vmul.f32 %v452_v34, %v399_v25 }
  0xaf   : > { %v520_v1 = vadd.f32 %v512_v60, %v460_v57  ;;  %v309_v57 = vld [vmem:[%s895_s17 + $0x10] sm:$0xff]  }
  0xb0   : > { %v462_v59 = vmul.f32 %v437_v30, %v391_v53  ;;  %v517_v30 = vmul.f32 %v809_v47, %v504_v39  ;;  %v594_v39 = vunpack.c.h.bf16 %v305_v24 }
  0xb1   : > { %v527_v2 = vpack.c.bf16 %v520_v1, %v519_v63  ;;  %v598_v1 = vunpack.c.h.bf16 %v309_v57 }
  0xb2   : > { %v522_v0 = vadd.f32 %v514_v55, %v462_v59  ;;  %v525_v32 = vadd.f32 %v517_v30, %v465_v29  ;;  %v597_v59 = vunpack.c.l.bf16 %v309_v57 }
  0xb3   : > { %777 = vmatmul.msk.bf16.vlgmr.msra.gmra.mxu1 %vm551_vm1, %v527_v2  ;;  %v400_v22 = vpop.f32.mrf.mxu2 }
  0xb4   : > { %v528_v3 = vpack.c.bf16 %v522_v0, %v521_v62  ;;  %v401_v23 = vadd.f32 %v810_v43, %v400_v22  ;;  %v595_v43 = vunpack.c.l.bf16 %v307_v41  ;;  %v600_v22 = vunpack.c.h.bf16 %v311_v8 }
  0xb6   : > { %778 = vmatmul.msk.bf16.vlgmr.msra.gmra.mxu3 %vm551_vm1, %v528_v3  ;;  %v466_v26 = vmul.f32 %v457_v37, %v401_v23 }
  0xb8   : > { %v526_v31 = vadd.f32 %v518_v28, %v466_v26 }
  0xba   : > { %v530_v35 = vpack.c.bf16 %v526_v31, %v525_v32 }
  0xc6   : > { %779 = vmatmul.msk.bf16.gmra.mxu3 %vm551_vm1, %v529_v19 }
  0xd6   : > { %780 = vmatmul.msk.bf16.gmra.mxu3 %vm551_vm1, %v530_v35 }
 0x130   : > { %v573_v36 = vpop.f32.mrf.mxu1 }
 0x131   : > { %v574_v40 = vadd.f32 %v811_v27, %v573_v36 }
 0x133   : > { %v601_v42 = vsub.f32 %v593_v33, %v574_v40 }
 0x135   : > { %v609_v37 = vand.u32 2147483647, %v601_v42 }
 0x137   : > { %v617_v44 = vsel %vm361_vm0, %v609_v37, 0.0 }
 0x138   : > { %v575_v45 = vpop.f32.mrf.mxu1  ;;  %618 = vadd.xlane.f32.xlu1 %v617_v44 }
 0x139   : > { %v578_v38 = vpop.f32.mrf.mxu3  ;;  %v576_v47 = vadd.f32 %v811_v27, %v575_v45 }
 0x13a   : > { %v579_v34 = vadd.f32 %v811_v27, %v578_v38 }
 0x13b   : > { %v602_v48 = vsub.f32 %v594_v39, %v576_v47 }
 0x13c   : > { %v603_v46 = vsub.f32 %v595_v43, %v579_v34 }
 0x13d   : > { %v610_v52 = vand.u32 2147483647, %v602_v48 }
 0x13e   : > { %v611_v49 = vand.u32 2147483647, %v603_v46 }
 0x13f   : > { %v620_v55 = vsel %vm361_vm0, %v610_v52, 0.0 }
 0x140   : > { %v623_v51 = vsel %vm361_vm0, %v611_v49, 0.0  ;;  %621 = vadd.xlane.f32.xlu2 %v620_v55 }
 0x141   : > { %v580_v53 = vpop.f32.mrf.mxu3  ;;  %624 = vadd.xlane.f32.xlu0 %v623_v51 }
 0x142   : > { %v581_v54 = vadd.f32 %v811_v27, %v580_v53 }
 0x144   : > { %v604_v56 = vsub.f32 %v596_v50, %v581_v54 }
 0x146   : > { %v612_v58 = vand.u32 2147483647, %v604_v56 }
 0x148   : > { %v626_v62 = vsel %vm361_vm0, %v612_v58, 0.0 }
 0x149   : > { %v583_v60 = vpop.f32.mrf.mxu3  ;;  %627 = vadd.xlane.f32.xlu2 %v626_v62 }
 0x14a   : > { %v584_v61 = vadd.f32 %v811_v27, %v583_v60 }
 0x14c   : > { %v605_v63 = vsub.f32 %v597_v59, %v584_v61 }
 0x14e   : > { %v613_v0 = vand.u32 2147483647, %v605_v63 }
 0x150   : > { %v629_v2 = vsel %vm361_vm0, %v613_v0, 0.0 }
 0x151   : > { %v585_v3 = vpop.f32.mrf.mxu3  ;;  %630 = vadd.xlane.f32.xlu1 %v629_v2 }
 0x152   : > { %v586_v5 = vadd.f32 %v811_v27, %v585_v3 }
 0x154   : > { %v606_v7 = vsub.f32 %v598_v1, %v586_v5 }
 0x156   : > { %v614_v9 = vand.u32 2147483647, %v606_v7 }
 0x158   : > { %v632_v13 = vsel %vm361_vm0, %v614_v9, 0.0 }
 0x159   : > { %v588_v15 = vpop.f32.mrf.mxu3  ;;  %633 = vadd.xlane.f32.xlu2 %v632_v13 }
 0x15a   : > { %v589_v16 = vadd.f32 %v811_v27, %v588_v15 }
 0x15c   : > { %v607_v17 = vsub.f32 %v599_v11, %v589_v16 }
 0x15e   : > { %v615_v19 = vand.u32 2147483647, %v607_v17 }
 0x160   : > { %v635_v23 = vsel %vm361_vm0, %v615_v19, 0.0 }
 0x161   : > { %v590_v25 = vpop.f32.mrf.mxu3  ;;  %636 = vadd.xlane.f32.xlu0 %v635_v23 }
 0x162   : > { %v591_v26 = vadd.f32 %v811_v27, %v590_v25 }
 0x164   : > { %v608_v28 = vsub.f32 %v600_v22, %v591_v26 }
 0x166   : > { %v616_v29 = vand.u32 2147483647, %v608_v28 }
 0x168   : > { %v638_v30 = vsel %vm361_vm0, %v616_v29, 0.0 }
 0x169   : > { %639 = vadd.xlane.f32.xlu1 %v638_v30 }
 0x1ab   : > { %v619_v31 = vpop.xlane.xlu1 %618 }
 0x1ac   : > { %v641_v32 = vmul.f32 %v619_v31, %v935_v21 }
 0x1ae   : > { %650 = vst.msk [vmem:[%s302_s10] sm:$0xff] %vm649_vm2, %v641_v32 }
 0x1b3   : > { %v622_v27 = vpop.xlane.xlu2 %621 }
 0x1b4   : > { %v625_v35 = vpop.xlane.xlu0 %624  ;;  %v642_v33 = vmul.f32 %v622_v27, %v932_v20 }
 0x1b5   : > { %v643_v24 = vmul.f32 %v625_v35, %v890_v4 }
 0x1b6   : > { %651 = vst.msk [vmem:[%s302_s10 + $0x8] sm:$0xff] %vm649_vm2, %v642_v33 }
 0x1b7   : > { %652 = vst.msk [vmem:[%s302_s10 + $0x10] sm:$0xff] %vm649_vm2, %v643_v24 }
 0x1bc   : > { %v628_v36 = vpop.xlane.xlu2 %627 }
 0x1bd   : > { %v644_v40 = vmul.f32 %v628_v36, %v906_v10 }
 0x1bf   : > { %653 = vst.msk [vmem:[%s302_s10 + $0x18] sm:$0xff] %vm649_vm2, %v644_v40 }
 0x1c4   : > { %v631_v41 = vpop.xlane.xlu1 %630 }
 0x1c5   : > { %v645_v21 = vmul.f32 %v631_v41, %v900_v6 }
 0x1c7   : > { %654 = vst.msk [vmem:[%s302_s10 + $0x20] sm:$0xff] %vm649_vm2, %v645_v21 }
 0x1cc   : > { %v634_v42 = vpop.xlane.xlu2 %633 }
 0x1cd   : > { %v646_v4 = vmul.f32 %v634_v42, %v912_v12 }
 0x1cf   : > { %655 = vst.msk [vmem:[%s302_s10 + $0x28] sm:$0xff] %vm649_vm2, %v646_v4 }
 0x1d4   : > { %v637_v43 = vpop.xlane.xlu0 %636 }
 0x1d5   : > { %v647_v20 = vmul.f32 %v637_v43, %v917_v14 }
 0x1d7   : > { %656 = vst.msk [vmem:[%s302_s10 + $0x30] sm:$0xff] %vm649_vm2, %v647_v20 }
 0x1dc   : > { %v640_v37 = vpop.xlane.xlu1 %639 }
 0x1dd   : > { %v648_v10 = vmul.f32 %v640_v37, %v925_v18 }
 0x1df   : > { %657 = vst.msk [vmem:[%s302_s10 + $0x38] sm:$0xff] %vm649_vm2, %v648_v10 }
 0x1e0 PF: > { %s17_s24 = sadd.s32 1, %s818_s24  }
 0x1e1   : > { %p14_p4 = scmp.ge.s32.totalorder %s17_s24, 4  }
 0x1e3   :  { %16 = sbr.rel (!%p14_p4) target bundleno = 1 (0x1), region = 81 }

</bundles_post_ra>
